<compile_context>
chip_gen: v7x
topology: tpu7x:2x2x1
jax: 0.10.0
libtpu: 0.0.40
codegen_flags: <defaults>
</compile_context>

<pallas_src>
import jax
import jax.numpy as jnp
from jax.experimental import pallas as pl
from jax.experimental.pallas import tpu as pltpu

_MIB = 1024 * 1024


def _conv_moments_kernel(w_ref, col_ref, y_ref, mom_ref):
    """One H tile: y = W @ col_tile (bf16 in, f32 acc), per-tile channel moments, bf16 y out."""
    y = jnp.dot(w_ref[...], col_ref[...], preferred_element_type=jnp.float32)  # (C_out, th) f32
    s = jnp.sum(y, axis=1, keepdims=True)        # (C_out, 1)
    ss = jnp.sum(y * y, axis=1, keepdims=True)   # (C_out, 1)
    mom_ref[...] = jnp.concatenate([s, ss], axis=1)[None]   # (1, C_out, 2)
    y_ref[...] = y.astype(jnp.bfloat16)          # halve the y HBM stream


def _bn_relu_kernel(y_ref, scale_ref, shift_ref, o_ref):
    """One H tile: fused per-channel affine BN + ReLU (bf16 y in, f32 out)."""
    o_ref[...] = jnp.maximum(y_ref[...] * scale_ref[...] + shift_ref[...], 0.0)


def _pick_tiling(H, K, C_out):
    """Pick lane tile th (mult of 128): minimal padding, prefer wide tiles, >=2 tiles
    when possible (v7x megacore), pass-1 VMEM working set bounded."""
    H128 = pl.cdiv(H, 128) * 128
    n_min = 2 if H128 >= 256 else 1
    vmem_budget = 24 * _MIB

    def p1_bytes(t):
        return (2 * C_out * K * 2       # resident weights, double-buffered bf16
                + 2 * K * t * 2         # col tile, double-buffered bf16
                + 2 * C_out * t * 2     # y tile, double-buffered bf16
                + 2 * C_out * 2 * 4)    # moments

    best = None
    for t in range(128, min(2048, H128) + 128, 128):
        if t > H128:
            break
        n = pl.cdiv(H128, t)
        if n < n_min:
            continue
        if p1_bytes(t) > vmem_budget and t > 128:
            continue
        hp = n * t
        key = (hp, -t)                  # least padding first, then widest lane tile
        if best is None or key < best[0]:
            best = (key, t, hp, n)
    _, th, Hp, n_tiles = best
    return th, Hp, n_tiles, p1_bytes(th)


def octree_conv_fast_bn_relu(data_in, neigh, weights, gamma, beta, *, bn_eps=1e-5):
    """data_in: (1, C_in, H, 1) NCHW octree features
       neigh:   (H, kdim) int32 neighbor table (-1 => empty neighbor)
       weights: (C_out, C_in, kdim) conv weights
       gamma, beta: (C_out,) BatchNorm2d affine params
       returns: (1, C_out, H, 1) float32
    """
    x = data_in[0, :, :, 0]                           # (C_in, H)
    C_in, H = x.shape
    C_out, _, kdim = weights.shape
    K = C_in * kdim

    # ---- H tiling ----
    th, Hp, n_tiles, p1_need = _pick_tiling(H, K, C_out)
    p2_need = 2 * C_out * th * 2 + 4 * C_out * 4 + 2 * C_out * th * 4
    need = max(p1_need, p2_need)
    vmem_limit = min(max(need + 4 * _MIB, 16 * _MIB), 32 * _MIB)
    vmem_limit = max(vmem_limit, need + 2 * _MIB)     # guard for pathological huge K

    # ---- octree2col gather at the XLA level (bf16, no mask pass, no K*Hp transpose) ----
    # Append a zero column at index H; remap empty neighbors (-1) and padded nodes to it.
    x16 = jnp.concatenate(
        [x.astype(jnp.bfloat16), jnp.zeros((C_in, 1), jnp.bfloat16)], axis=1)   # (C_in, H+1)
    neigh_p = jnp.pad(neigh, ((0, Hp - H), (0, 0)), constant_values=-1)         # (Hp, kdim)
    idx = jnp.where(neigh_p >= 0, neigh_p, H).T                                 # (kdim, Hp)
    col = jnp.take(x16, idx, axis=1).reshape(K, Hp)                             # (K, Hp) bf16

    w16 = weights.reshape(C_out, K).astype(jnp.bfloat16)                        # (C_out, K)

    cparams = pltpu.CompilerParams(
        dimension_semantics=("parallel",),
        vmem_limit_bytes=int(vmem_limit),
    )

    # ---- Pass 1: conv (MXU) + per-tile channel moments, y stored bf16 ----
    y, moments = pl.pallas_call(
        _conv_moments_kernel,
        out_shape=(
            jax.ShapeDtypeStruct((C_out, Hp), jnp.bfloat16),
            jax.ShapeDtypeStruct((n_tiles, C_out, 2), jnp.float32),
        ),
        grid_spec=pltpu.PrefetchScalarGridSpec(
            num_scalar_prefetch=0,
            grid=(n_tiles,),
            in_specs=[
                pl.BlockSpec((C_out, K), lambda i: (0, 0)),   # weights: resident, no re-DMA
                pl.BlockSpec((K, th), lambda i: (0, i)),      # col H-tile
            ],
            out_specs=[
                pl.BlockSpec((C_out, th), lambda i: (0, i)),       # conv output tile (bf16)
                pl.BlockSpec((1, C_out, 2), lambda i: (i, 0, 0)),  # per-tile moments
            ],
        ),
        compiler_params=cparams,
    )(w16, col)

    # ---- Host reduction: BN stats over the TRUE H (padded cols are exactly 0 and excluded) ----
    total = jnp.sum(moments, axis=0)                  # (C_out, 2)
    mean = total[:, 0] / H
    var = jnp.maximum(total[:, 1] / H - mean * mean, 0.0)
    inv = jax.lax.rsqrt(var + jnp.float32(bn_eps))
    gamma = gamma.astype(jnp.float32)
    beta = beta.astype(jnp.float32)
    scale = (gamma * inv).reshape(C_out, 1)
    shift = (beta - gamma * mean * inv).reshape(C_out, 1)

    # ---- Pass 2: fused BN affine + ReLU ----
    out = pl.pallas_call(
        _bn_relu_kernel,
        out_shape=jax.ShapeDtypeStruct((C_out, Hp), jnp.float32),
        grid_spec=pltpu.PrefetchScalarGridSpec(
            num_scalar_prefetch=0,
            grid=(n_tiles,),
            in_specs=[
                pl.BlockSpec((C_out, th), lambda i: (0, i)),
                pl.BlockSpec((C_out, 1), lambda i: (0, 0)),
                pl.BlockSpec((C_out, 1), lambda i: (0, 0)),
            ],
            out_specs=pl.BlockSpec((C_out, th), lambda i: (0, i)),
        ),
        compiler_params=cparams,
    )(y, scale, shift)

    return out[:, :H].reshape(1, C_out, H, 1)


if __name__ == "__main__":
    key = jax.random.PRNGKey(0)
    k_data, k_w, k_neigh = jax.random.split(key, 3)

    # Small octree-like problem (H = #octree nodes at this depth).
    C_in, C_out = 8, 16
    kernel_size = 3
    kdim = kernel_size ** 3          # 27 (kernel_size=[3] in ocnn)
    H = 128
    bn_eps = 1e-5

    data_in = jax.random.normal(k_data, (1, C_in, H, 1), dtype=jnp.float32)
    weights = (jax.random.normal(k_w, (C_out, C_in, kdim), dtype=jnp.float32)
               * (1.0 / jnp.sqrt(C_in * kdim)))
    # Synthetic octree neighbor table: indices in [-1, H), -1 == empty neighbor.
    neigh = jax.random.randint(k_neigh, (H, kdim), -1, H, dtype=jnp.int32)
    gamma = jnp.ones((C_out,), jnp.float32)   # BatchNorm2d default init
    beta = jnp.zeros((C_out,), jnp.float32)

    out = octree_conv_fast_bn_relu(data_in, neigh, weights, gamma, beta, bn_eps=bn_eps)
    out = jax.block_until_ready(out)

    # Pure-JAX reference (f32) of the same forward pass.
    x = data_in[0, :, :, 0]
    g = jnp.where(neigh[None, :, :] >= 0, x[:, jnp.clip(neigh, 0, H - 1)], 0.0)
    col_ref = jnp.transpose(g, (0, 2, 1)).reshape(C_in * kdim, H)
    y_ref = weights.reshape(C_out, C_in * kdim) @ col_ref
    mu = jnp.mean(y_ref, axis=1, keepdims=True)
    vr = jnp.mean((y_ref - mu) ** 2, axis=1, keepdims=True)
    ref = jnp.maximum(gamma[:, None] * (y_ref - mu) * jax.lax.rsqrt(vr + bn_eps)
                      + beta[:, None], 0.0).reshape(1, C_out, H, 1)

    assert out.shape == (1, C_out, H, 1)
    assert bool(jnp.all(out >= 0.0))                      # ReLU post-condition
    max_err = float(jnp.max(jnp.abs(out - ref)))
    assert max_err < 6e-2, f"max abs error {max_err}"     # bf16 matmul + bf16 y tolerance
    print("KERNEL_OK")
</pallas_src>

<mosaic_0001>
module attributes {stable_mosaic.version = 11 : i64} {
  func.func @_conv_moments_kernel(%arg0: i32, %arg1: memref<16x216xbf16, #tpu.memory_space<vmem>>, %arg2: memref<216x128xbf16, #tpu.memory_space<vmem>>, %arg3: memref<16x128xbf16, #tpu.memory_space<vmem>>, %arg4: memref<1x16x2xf32, #tpu.memory_space<vmem>>) attributes {dimension_semantics = [#tpu.dimension_semantics<parallel>], iteration_bounds = array<i64: 1>, scalar_prefetch = 0 : i64, scratch_operands = 0 : i64, tpu.core_type = #tpu.core_type<tc>, window_params = [{pipeline_mode = #tpu.pipeline_mode<synchronous>, transform_indices = @transform_0, window_bounds = array<i64: 16, 216>}, {transform_indices = @transform_1, window_bounds = array<i64: 216, 128>}, {transform_indices = @transform_2, window_bounds = array<i64: 16, 128>}, {transform_indices = @transform_3, window_bounds = array<i64: 1, 16, 2>}]} {
    %c0 = arith.constant 0 : index
    %c0_0 = arith.constant 0 : index
    %0 = vector.load %arg1[%c0, %c0_0] : memref<16x216xbf16, #tpu.memory_space<vmem>>, vector<16x216xbf16>
    %c0_1 = arith.constant 0 : index
    %c0_2 = arith.constant 0 : index
    %1 = vector.load %arg2[%c0_1, %c0_2] : memref<216x128xbf16, #tpu.memory_space<vmem>>, vector<216x128xbf16>
    %cst = arith.constant dense<0.000000e+00> : vector<16x128xf32>
    %2 = tpu.matmul %0, %1, %cst {dimension_numbers = #tpu.dot_dimension_numbers<[1], [0], [0], [1], [0, 0, 1, 1], [], []>} : vector<16x216xbf16>, vector<216x128xbf16>, vector<16x128xf32> -> vector<16x128xf32>
    %cst_3 = arith.constant dense<0.000000e+00> : vector<16xf32>
    %3 = vector.multi_reduction <add>, %2, %cst_3 [1] : vector<16x128xf32> to vector<16xf32>
    %4 = vector.shape_cast %3 : vector<16xf32> to vector<16x1xf32>
    %5 = arith.mulf %2, %2 : vector<16x128xf32>
    %cst_4 = arith.constant dense<0.000000e+00> : vector<16xf32>
    %6 = vector.multi_reduction <add>, %5, %cst_4 [1] : vector<16x128xf32> to vector<16xf32>
    %7 = vector.shape_cast %6 : vector<16xf32> to vector<16x1xf32>
    %8 = tpu.concatenate %4, %7 in 1 : vector<16x1xf32>, vector<16x1xf32> -> vector<16x2xf32>
    %9 = vector.shape_cast %8 : vector<16x2xf32> to vector<1x16x2xf32>
    %c0_5 = arith.constant 0 : index
    %c0_6 = arith.constant 0 : index
    %c0_7 = arith.constant 0 : index
    %10 = vector.load %arg4[%c0_5, %c0_6, %c0_7] : memref<1x16x2xf32, #tpu.memory_space<vmem>>, vector<1x16x2xf32>
    tpu.vector_store %arg4[%c0_5, %c0_6, %c0_7], %9 {strides = array<i32>} : memref<1x16x2xf32, #tpu.memory_space<vmem>>, vector<1x16x2xf32>,
    %11 = arith.truncf %2 : vector<16x128xf32> to vector<16x128xbf16>
    %c0_8 = arith.constant 0 : index
    %c0_9 = arith.constant 0 : index
    %12 = vector.load %arg3[%c0_8, %c0_9] : memref<16x128xbf16, #tpu.memory_space<vmem>>, vector<16x128xbf16>
    tpu.vector_store %arg3[%c0_8, %c0_9], %11 {strides = array<i32>} : memref<16x128xbf16, #tpu.memory_space<vmem>>, vector<16x128xbf16>,
    return
  }
  func.func @transform_0(%arg0: i32) -> (i32, i32) {
    %c0_i32 = arith.constant 0 : i32
    %c0_i32_0 = arith.constant 0 : i32
    %c0_i32_1 = arith.constant 0 : i32
    return %c0_i32, %c0_i32_0 : i32, i32
  }
  func.func @transform_1(%arg0: i32) -> (i32, i32) {
    %c0_i32 = arith.constant 0 : i32
    %c0_i32_0 = arith.constant 0 : i32
    return %c0_i32, %arg0 : i32, i32
  }
  func.func @transform_2(%arg0: i32) -> (i32, i32) {
    %c0_i32 = arith.constant 0 : i32
    %c0_i32_0 = arith.constant 0 : i32
    return %c0_i32, %arg0 : i32, i32
  }
  func.func @transform_3(%arg0: i32) -> (i32, i32, i32) {
    %c0_i32 = arith.constant 0 : i32
    %c0_i32_0 = arith.constant 0 : i32
    %c0_i32_1 = arith.constant 0 : i32
    return %arg0, %c0_i32, %c0_i32_0 : i32, i32, i32
  }
}

</mosaic_0001>

<bundles_post_ra>
// kernel: tpu_custom_call.1
= control target key start
LH: loop header
LB: loop body
LE: loop exit
PB: predicated region body
PF: predicated region fallthrough
CT: control target
= control target key end

     0   :  { %9 = vsyncpa [#allocation3], 0  ;;  %s458_s0 = inlined_call_operand.hbm [shape: bf16[16,216], index: 0, kind: input, shape index: {}]   ;;  %s459_s1 = inlined_call_operand.hbm [shape: bf16[216,128], index: 1, kind: input, shape index: {}]   ;;  %s460_s2 = inlined_call_operand.hbm [shape: bf16[16,128], index: 2, kind: output, shape index: {0}]   ;;  %s461_s3 = inlined_call_operand.vmem [shape: f32[1,16,2], index: 3, kind: output, shape index: {1}]  }
   0x1   :  { %10 = vsyncpa [#allocation6], 0 }
   0x2   :  { %11 = vsyncpa [#allocation4], 0  ;;  %s382_s12 = smov [#allocation2]   ;;  %s310_s16 = scalar_lea.hbm %s458_s0, 256 }
   0x3   :  { %s17_s13 = sshll.u32 %s382_s12, 4  ;;  %p311_p0 = scmp.ne.s32.totalorder %s458_s0, %s310_s16  ;;  %s18_s13 = int_to_ptr.vmem [resolvable:$true] %s17_s13 }
   0x4   :  { %p314_p1 = scmp.lt.u32.totalorder %s310_s16, %s458_s0 }
   0x6   :  { %p316_p2 = pnand %p314_p1, %p311_p0 }
   0x8   :  { %319 = shalt.err (!%p316_p2)
}
   0x9   :  { %s320_s21 = scalar_lea.vmem %s18_s13, 256  ;;  %p325_p4 = scmp.lt.s32.totalorder %s18_s13, %s18_s13 }
   0xa   :  { %p321_p3 = scmp.ne.s32.totalorder %s18_s13, %s320_s21  ;;  %p326_p5 = scmp.lt.s32.totalorder %s320_s21, %s320_s21 }
   0xc   :  { %p327_p6 = por %p326_p5, %p325_p4 }
   0xe   :  { %p328_p7 = pnand %p327_p6, %p321_p3 }
  0x10   :  { %331 = shalt.err (!%p328_p7)
}
  0x11   :  { %s383_s22 = smov 128   ;;  %s384_s23 = smov 8  }
  0x12   :  { %23 = dma.hbm_to_vmem [thread:$0]  %s458_s0, 256, %s18_s13, [#allocation3], %s383_s22, %s383_s22, %s384_s23  }
  0x13   :  { %s385_s26 = smov [#allocation5]   ;;  %s332_s30 = scalar_lea.hbm %s459_s1, 1728 }
  0x14   :  { %s29_s27 = sshll.u32 %s385_s26, 4  ;;  %p333_p8 = scmp.ne.s32.totalorder %s459_s1, %s332_s30  ;;  %s30_s27 = int_to_ptr.vmem [resolvable:$true] %s29_s27 }
  0x15   :  { %p336_p9 = scmp.lt.u32.totalorder %s332_s30, %s459_s1 }
  0x17   :  { %p338_p10 = pnand %p336_p9, %p333_p8 }
  0x19   :  { %341 = shalt.err (!%p338_p10)
}
  0x1a   :  { %s342_s8 = scalar_lea.vmem %s30_s27, 1728  ;;  %p347_p12 = scmp.lt.s32.totalorder %s30_s27, %s30_s27 }
  0x1b   :  { %p343_p11 = scmp.ne.s32.totalorder %s30_s27, %s342_s8  ;;  %p348_p13 = scmp.lt.s32.totalorder %s342_s8, %s342_s8 }
  0x1d   :  { %p349_p0 = por %p348_p13, %p347_p12 }
  0x1f   :  { %p350_p1 = pnand %p349_p0, %p343_p11 }
  0x21   :  { %353 = shalt.err (!%p350_p1)
}
  0x22   :  { %s386_s0 = smov 64   ;;  %s387_s9 = smov 4  }
  0x23   :  { %35 = dma.hbm_to_vmem [thread:$0]  %s459_s1, 1728, %s30_s27, [#allocation6], %s386_s0, %s386_s0, %s387_s9  }
  0x24   :  { %376 = dma.done.wait [#allocation3], 256  }
  0x25   :  { %377 = vsyncadd [#allocation3], 4294967040 }
  0x26   :  { %378 = dma.done.wait [#allocation6], 1728  }
  0x27   :  { %379 = vsyncadd [#allocation6], 4294965568  ;;  %v388_v0 = vmov 0   ;;  %v293_v1 = vld [vmem:[#allocation5] sm:$0xff]   ;;  %v294_v2 = vld [vmem:[#allocation5 + $0x8] sm:$0xff]   ;;  %vm162_vm0 = vcmask 719872  }
  0x28   :  { %170 = vmatprep.subr.bf16.mxu0 %v388_v0  ;;  %v295_v3 = vld [vmem:[#allocation5 + $0x10] sm:$0xff]   ;;  %v296_v4 = vld [vmem:[#allocation5 + $0x18] sm:$0xff]   ;;  %v297_v5 = vld [vmem:[#allocation5 + $0x20] sm:$0xff]   ;;  %vm166_vm1 = vcmask 1043456   ;;  %s389_s1 = smov [#allocation7]  }
  0x29   :  { %171 = vmatpush1.bf16.msra.mxu0 %v293_v1  ;;  %v309_v6 = vld [vmem:[#allocation2 + $0x4] ss:$8 sps:$4 sm:$0xff]   ;;  %v298_v7 = vld [vmem:[#allocation5 + $0x28] sm:$0xff]   ;;  %v301_v10 = vld [vmem:[#allocation5 + $0x40] sm:$0xff]   ;;  %s242_s12 = sshll.u32 %s389_s1, 4  ;;  %s243_s12 = int_to_ptr.vmem [resolvable:$true] %s242_s12 }
  0x2a   :  { %172 = vmatprep.subr.bf16.mxu0 %v388_v0  ;;  %275 = vmatprep.mubr.msk.bf16.mxu0 %vm162_vm0, %v309_v6  ;;  %v299_v8 = vld [vmem:[#allocation5 + $0x30] sm:$0xff]   ;;  %v300_v9 = vld [vmem:[#allocation5 + $0x38] sm:$0xff]   ;;  %v302_v11 = vld [vmem:[#allocation5 + $0x48] sm:$0xff]   ;;  %s354_s13 = scalar_lea.vmem %s243_s12, 128  ;;  %p359_p3 = scmp.lt.s32.totalorder %s243_s12, %s243_s12 }
  0x2b   :  { %v303_v12 = vld [vmem:[#allocation5 + $0x50] sm:$0xff]   ;;  %v304_v13 = vld [vmem:[#allocation5 + $0x58] sm:$0xff]   ;;  %v305_v14 = vld [vmem:[#allocation5 + $0x60] sm:$0xff]   ;;  %p355_p2 = scmp.ne.s32.totalorder %s243_s12, %s354_s13  ;;  %p360_p4 = scmp.lt.s32.totalorder %s354_s13, %s354_s13 }
  0x2c   :  { %v306_v15 = vld [vmem:[#allocation5 + $0x68] ss:$0 sps:$4 sm:$0xff]   ;;  %v307_v17 = vld [vmem:[#allocation2] ss:$8 sps:$4 sm:$0xff]  }
  0x2d   :  { %173 = vmatpush1.bf16.msra.mxu0 %v294_v2  ;;  %v168_v16 = vsel %vm166_vm1, %v306_v15, 0  ;;  %p361_p5 = por %p360_p4, %p359_p3 }
  0x2e   :  { %174 = vmatprep.subr.bf16.mxu0 %v388_v0 }
  0x2f   :  { %p362_p6 = pnand %p361_p5, %p355_p2 }
  0x31   :  { %175 = vmatpush1.bf16.msra.mxu0 %v295_v3 }
  0x32   :  { %176 = vmatprep.subr.bf16.mxu0 %v388_v0 }
  0x35   :  { %177 = vmatpush1.bf16.msra.mxu0 %v296_v4 }
  0x36   :  { %178 = vmatprep.subr.bf16.mxu0 %v388_v0 }
  0x39   :  { %179 = vmatpush1.bf16.msra.mxu0 %v297_v5 }
  0x3a   :  { %180 = vmatprep.subr.bf16.mxu0 %v388_v0 }
  0x3d   :  { %181 = vmatpush1.bf16.msra.mxu0 %v298_v7 }
  0x3e   :  { %182 = vmatprep.subr.bf16.mxu0 %v388_v0 }
  0x41   :  { %183 = vmatpush1.bf16.msra.mxu0 %v299_v8 }
  0x42   :  { %184 = vmatprep.subr.bf16.mxu0 %v388_v0 }
  0x45   :  { %185 = vmatpush1.bf16.msra.mxu0 %v300_v9 }
  0x46   :  { %186 = vmatprep.subr.bf16.mxu0 %v388_v0 }
  0x49   :  { %187 = vmatpush1.bf16.msra.mxu0 %v301_v10 }
  0x4a   :  { %188 = vmatprep.subr.bf16.mxu0 %v388_v0 }
  0x4d   :  { %189 = vmatpush1.bf16.msra.mxu0 %v302_v11 }
  0x4e   :  { %190 = vmatprep.subr.bf16.mxu0 %v388_v0 }
  0x51   :  { %191 = vmatpush1.bf16.msra.mxu0 %v303_v12 }
  0x52   :  { %192 = vmatprep.subr.bf16.mxu0 %v388_v0 }
  0x55   :  { %193 = vmatpush1.bf16.msra.mxu0 %v304_v13 }
  0x56   :  { %194 = vmatprep.subr.bf16.mxu0 %v388_v0 }
  0x59   :  { %195 = vmatpush1.bf16.msra.mxu0 %v305_v14 }
  0x5a   :  { %196 = vmatprep.subr.bf16.mxu0 %v388_v0 }
  0x5d   :  { %197 = vmatpush1.bf16.msra.mxu0 %v168_v16 }
  0x60   :  { %203 = vmatmul.mubr.bf16.vlgmr.msra.gmra.mrb[0].mxu0 %v307_v17 }
 0x133   :  { %v204_v18 = vpop.f32.mrb[0].mxu0 }
 0x134   :  { %211 = vadd.xlane.f32.xlu0 %v204_v18  ;;  %v206_v19 = vpop.f32.mrb[1].mxu0  ;;  %v215_v20 = vmul.f32 %v204_v18, %v204_v18 }
 0x135   :  { %v207_v21 = vpop.f32.mrb[2].mxu0 }
 0x136   :  { %v283_v22 = vpack.c.bf16 %v207_v21, %v204_v18  ;;  %217 = vadd.xlane.f32.xlu1 %v215_v20  ;;  %v209_v23 = vpop.f32.mrb[3].mxu0  ;;  %v216_v24 = vmul.f32 %v207_v21, %v207_v21 }
 0x138   :  { %284 = vst [vmem:[#allocation7] sm:$0xff] %v283_v22   ;;  %213 = vadd.xlane.f32.xlu0 %v207_v21 }
 0x13a   :  { %219 = vadd.xlane.f32.xlu1 %v216_v24 }
 0x13b   :  { %365 = shalt.err (!%p362_p6)
}
 0x13c   :  { %s366_s16 = scalar_lea.hbm %s460_s2, 128 }
 0x13d   :  { %p367_p7 = scmp.ne.s32.totalorder %s460_s2, %s366_s16  ;;  %p370_p8 = scmp.lt.u32.totalorder %s366_s16, %s460_s2 }
 0x13f   :  { %p372_p9 = pnand %p370_p8, %p367_p7 }
 0x141   :  { %375 = shalt.err (!%p372_p9)
}
 0x142   :  { %248 = dma.vmem_to_hbm [thread:$0]  %s243_s12, 128, %s460_s2, [#allocation4], %s386_s0, %s386_s0, %s387_s9   ;;  %vm221_vm2 = vcmask 7168   ;;  %vm224_vm3 = vcmask 15360  }
 0x1c1   :  { %v212_v25 = vpop.xlane.xlu0 %211 }
 0x1c3   :  { %v218_v26 = vpop.xlane.xlu1 %217 }
 0x1c4   :  { %v222_v27 = vsel %vm221_vm2, %v212_v25, %v218_v26 }
 0x1c5   :  { %225 = vst.msk [vmem:[%s461_s3] sm:$0xff] %vm224_vm3, %v222_v27  ;;  %v214_v28 = vpop.xlane.xlu0 %213 }
 0x1c7   :  { %v220_v29 = vpop.xlane.xlu1 %219 }
 0x1c8   :  { %v223_v30 = vsel %vm221_vm2, %v214_v28, %v220_v29 }
 0x1c9   :  { %226 = vst.msk [vmem:[%s461_s3 + $0x8] sm:$0xff] %vm224_vm3, %v223_v30 }
 0x1ca   :  { %380 = dma.done.wait [#allocation4], 128  }
 0x1cb   :  { %381 = vsyncadd [#allocation4], 4294967168 }
 0x1cc   :  { %256 = vsyncpa [#allocation3], 1 }
 0x1cd   :  { %257 = vsyncpa [#allocation6], 1 }
 0x1ce   :  { %258 = vsyncpa [#allocation4], 1 }

</bundles_post_ra>
